<compile_context>
chip_gen: v6e
topology: v6e:2x2x1
jax: 0.10.0
libtpu: 0.0.40
codegen_flags: <defaults>
</compile_context>

<pallas_src>
import functools

import jax
import jax.numpy as jnp
from jax import lax
from jax.experimental import pallas as pl
from jax.experimental.pallas import tpu as pltpu

LANE = 128        # vreg lane width; last dim of the 2-D slab
TILE_ROWS = 512   # 512 x 128 f32 = 256 KiB per block; in+out double-buffered ~1 MiB VMEM


def _mix32(z):
    """'lowbias32' finalizer: full-avalanche 32-bit integer hash (VPU-only ops)."""
    z = z ^ (z >> jnp.uint32(16))
    z = z * jnp.uint32(0x7FEB352D)
    z = z ^ (z >> jnp.uint32(15))
    z = z * jnp.uint32(0x846CA68B)
    z = z ^ (z >> jnp.uint32(16))
    return z


def _std_normal_from_bits(bits):
    """uint32 random bits -> approx N(0,1) via u in (-1,1) and erfinv (Giles 2010)."""
    # 23 random bits -> u strictly inside (-1, 1); (v + 0.5) is exact in f32 for v < 2^23.
    v = (bits >> jnp.uint32(9)).astype(jnp.int32).astype(jnp.float32)
    u = (v + 0.5) * jnp.float32(2.0 ** -22) - 1.0

    w = -jnp.log((1.0 - u) * (1.0 + u))

    # Central branch (w < 5).
    wc = w - 2.5
    p1 = jnp.float32(2.81022636e-08)
    for c in (3.43273939e-07, -3.5233877e-06, -4.39150654e-06, 0.00021858087,
              -0.00125372503, -0.00417768164, 0.246640727, 1.50140941):
        p1 = p1 * wc + jnp.float32(c)

    # Tail branch (w >= 5).
    wt = jnp.sqrt(w) - 3.0
    p2 = jnp.float32(-0.000200214257)
    for c in (0.000100950558, 0.00134934322, -0.00367342844, 0.00573950773,
              -0.0076224613, 0.00943887047, 1.00167406, 2.83297682):
        p2 = p2 * wt + jnp.float32(c)

    erfinv_u = jnp.where(w < 5.0, p1, p2) * u
    return jnp.float32(1.4142135623730951) * erfinv_u  # sqrt(2) * erfinv(u)


def _gaussian_noise_kernel(seed_ref, x_ref, o_ref, *, sigma):
    block_rows, lane = x_ref.shape
    # Globally unique per-element counter: distinct noise per grid block (and per
    # TensorCore when the grid axis is sharded across the v7x megacore).
    base = (pl.program_id(0) * (block_rows * lane)).astype(jnp.uint32)
    row = lax.broadcasted_iota(jnp.int32, (block_rows, lane), 0).astype(jnp.uint32)
    col = lax.broadcasted_iota(jnp.int32, (block_rows, lane), 1).astype(jnp.uint32)
    idx = base + row * jnp.uint32(lane) + col

    seed = seed_ref[0].astype(jnp.uint32)
    bits = _mix32(idx + seed * jnp.uint32(0x9E3779B9))
    z = _std_normal_from_bits(bits)

    x = x_ref[...].astype(jnp.float32)
    # forward semantics: x + N(0,1) * (sigma * x)  ==  x * (1 + sigma * z)  (fused scale)
    o_ref[...] = (x * (1.0 + jnp.float32(sigma) * z)).astype(o_ref.dtype)


def gaussian_noise(x, seed, *, sigma=0.01, training=True, is_relative_detach=True):
    """JAX/Pallas equivalent of GausianNoise.forward."""
    # TODO(synk): is_relative_detach only changes autograd (detach of the scale);
    # the forward value is identical, so it is ignored here.
    del is_relative_detach
    if (not training) or sigma == 0:
        return x

    orig_shape = x.shape
    orig_dtype = x.dtype

    flat = x.reshape(-1)                 # keep the original dtype at the HBM boundary
    n = flat.shape[0]
    pad = (-n) % LANE
    if pad:
        flat = jnp.pad(flat, (0, pad))
    rows = flat.shape[0] // LANE
    x2d = flat.reshape(rows, LANE)

    block_rows = min(rows, TILE_ROWS)    # bounded tiles: VMEM-safe on v5e/v6e/v7x
    grid = (pl.cdiv(rows, block_rows),)  # ragged last block handled by Pallas

    seed_arr = jnp.asarray([seed], dtype=jnp.int32)

    out2d = pl.pallas_call(
        functools.partial(_gaussian_noise_kernel, sigma=float(sigma)),
        out_shape=jax.ShapeDtypeStruct((rows, LANE), orig_dtype),
        grid_spec=pltpu.PrefetchScalarGridSpec(
            num_scalar_prefetch=1,
            grid=grid,
            in_specs=[pl.BlockSpec((block_rows, LANE), lambda i, seed: (i, 0))],
            out_specs=pl.BlockSpec((block_rows, LANE), lambda i, seed: (i, 0)),
        ),
        compiler_params=pltpu.CompilerParams(
            dimension_semantics=("parallel",)),
    )(seed_arr, x2d)

    out = out2d.reshape(-1)
    if pad:
        out = out[:n]
    return out.reshape(orig_shape)


if __name__ == "__main__":
    key = jax.random.PRNGKey(0)
    sigma = 0.01

    # NCHW input, matching the PyTorch convention.
    x = jax.random.normal(key, (2, 4, 16, 16), dtype=jnp.float32)

    # Training path: relative Gaussian noise is added.
    y_train = jax.block_until_ready(gaussian_noise(x, seed=0, sigma=sigma, training=True))
    # Eval path: identity.
    y_eval = jax.block_until_ready(gaussian_noise(x, seed=0, sigma=sigma, training=False))

    assert y_train.shape == x.shape and y_train.dtype == x.dtype
    assert bool(jnp.array_equal(y_eval, x))
    # Relative noise at sigma=0.01: output stays close to input but is not identical.
    assert bool(jnp.all(jnp.abs(y_train - x) <= 0.1 * jnp.abs(x) + 1e-6))
    assert not bool(jnp.array_equal(y_train, x))

    # Multi-block path (grid > 1, ragged last tile) + noise-statistics sanity check.
    x2 = jax.random.normal(jax.random.PRNGKey(1), (2, 8, 64, 65), dtype=jnp.float32)
    y2 = jax.block_until_ready(gaussian_noise(x2, seed=123, sigma=sigma, training=True))
    assert y2.shape == x2.shape and y2.dtype == x2.dtype
    assert bool(jnp.all(jnp.isfinite(y2)))
    z_rec = (y2 - x2) / (sigma * jnp.where(jnp.abs(x2) > 1e-6, x2, 1.0))
    assert bool(jnp.abs(jnp.mean(z_rec)) < 0.1)       # recovered noise ~ N(0,1)
    assert bool((jnp.std(z_rec) > 0.85) & (jnp.std(z_rec) < 1.15))

    print("KERNEL_OK")
</pallas_src>

<mosaic_0001>
module attributes {stable_mosaic.version = 11 : i64} {
  func.func @_gaussian_noise_kernel(%arg0: i32, %arg1: memref<1xi32, #tpu.memory_space<smem>>, %arg2: memref<16x128xf32, #tpu.memory_space<vmem>>, %arg3: memref<16x128xf32, #tpu.memory_space<vmem>>) attributes {dimension_semantics = [#tpu.dimension_semantics<parallel>], iteration_bounds = array<i64: 1>, scalar_prefetch = 1 : i64, scratch_operands = 0 : i64, tpu.core_type = #tpu.core_type<tc>, window_params = [{transform_indices = @transform_0, window_bounds = array<i64: 16, 128>}, {transform_indices = @transform_1, window_bounds = array<i64: 16, 128>}]} {
    %c2048_i32 = arith.constant 2048 : i32
    %0 = arith.muli %arg0, %c2048_i32 : i32
    %1 = tpu.iota {dimensions = array<i32: 0>} : vector<16x128xi32>
    %2 = tpu.iota {dimensions = array<i32: 1>} : vector<16x128xi32>
    %c128_i32 = arith.constant 128 : i32
    %3 = vector.broadcast %c128_i32 : i32 to vector<16x128xi32>
    %4 = arith.muli %1, %3 : vector<16x128xi32>
    %5 = vector.broadcast %0 : i32 to vector<16x128xi32>
    %6 = arith.addi %5, %4 : vector<16x128xi32>
    %7 = arith.addi %6, %2 : vector<16x128xi32>
    %c0 = arith.constant 0 : index
    %8 = memref.load %arg1[%c0] : memref<1xi32, #tpu.memory_space<smem>>
    %c-1640531527_i32 = arith.constant -1640531527 : i32
    %9 = arith.muli %8, %c-1640531527_i32 : i32
    %10 = vector.broadcast %9 : i32 to vector<16x128xi32>
    %11 = arith.addi %7, %10 : vector<16x128xi32>
    %c16_i32 = arith.constant 16 : i32
    %12 = vector.broadcast %c16_i32 : i32 to vector<16x128xi32>
    %13 = arith.shrui %11, %12 : vector<16x128xi32>
    %14 = arith.xori %11, %13 : vector<16x128xi32>
    %c2146121005_i32 = arith.constant 2146121005 : i32
    %15 = vector.broadcast %c2146121005_i32 : i32 to vector<16x128xi32>
    %16 = arith.muli %14, %15 : vector<16x128xi32>
    %c15_i32 = arith.constant 15 : i32
    %17 = vector.broadcast %c15_i32 : i32 to vector<16x128xi32>
    %18 = arith.shrui %16, %17 : vector<16x128xi32>
    %19 = arith.xori %16, %18 : vector<16x128xi32>
    %c-2073254261_i32 = arith.constant -2073254261 : i32
    %20 = vector.broadcast %c-2073254261_i32 : i32 to vector<16x128xi32>
    %21 = arith.muli %19, %20 : vector<16x128xi32>
    %c16_i32_0 = arith.constant 16 : i32
    %22 = vector.broadcast %c16_i32_0 : i32 to vector<16x128xi32>
    %23 = arith.shrui %21, %22 : vector<16x128xi32>
    %24 = arith.xori %21, %23 : vector<16x128xi32>
    %c9_i32 = arith.constant 9 : i32
    %25 = vector.broadcast %c9_i32 : i32 to vector<16x128xi32>
    %26 = arith.shrui %24, %25 : vector<16x128xi32>
    %27 = arith.sitofp %26 : vector<16x128xi32> to vector<16x128xf32>
    %cst = arith.constant 5.000000e-01 : f32
    %28 = vector.broadcast %cst : f32 to vector<16x128xf32>
    %29 = arith.addf %27, %28 : vector<16x128xf32>
    %cst_1 = arith.constant 2.38418579E-7 : f32
    %30 = vector.broadcast %cst_1 : f32 to vector<16x128xf32>
    %31 = arith.mulf %29, %30 : vector<16x128xf32>
    %cst_2 = arith.constant 1.000000e+00 : f32
    %32 = vector.broadcast %cst_2 : f32 to vector<16x128xf32>
    %33 = arith.subf %31, %32 : vector<16x128xf32>
    %cst_3 = arith.constant 1.000000e+00 : f32
    %34 = vector.broadcast %cst_3 : f32 to vector<16x128xf32>
    %35 = arith.subf %34, %33 : vector<16x128xf32>
    %cst_4 = arith.constant 1.000000e+00 : f32
    %36 = vector.broadcast %cst_4 : f32 to vector<16x128xf32>
    %37 = arith.addf %36, %33 : vector<16x128xf32>
    %38 = arith.mulf %35, %37 : vector<16x128xf32>
    %39 = math.log %38 : vector<16x128xf32>
    %cst_5 = arith.constant 0.000000e+00 : f32
    %40 = vector.broadcast %cst_5 : f32 to vector<16x128xf32>
    %41 = arith.subf %40, %39 : vector<16x128xf32>
    %cst_6 = arith.constant 2.500000e+00 : f32
    %42 = vector.broadcast %cst_6 : f32 to vector<16x128xf32>
    %43 = arith.subf %41, %42 : vector<16x128xf32>
    %cst_7 = arith.constant 2.81022636E-8 : f32
    %44 = vector.broadcast %cst_7 : f32 to vector<16x128xf32>
    %45 = arith.mulf %44, %43 : vector<16x128xf32>
    %cst_8 = arith.constant 3.43273939E-7 : f32
    %46 = vector.broadcast %cst_8 : f32 to vector<16x128xf32>
    %47 = arith.addf %45, %46 : vector<16x128xf32>
    %48 = arith.mulf %47, %43 : vector<16x128xf32>
    %cst_9 = arith.constant -3.5233877E-6 : f32
    %49 = vector.broadcast %cst_9 : f32 to vector<16x128xf32>
    %50 = arith.addf %48, %49 : vector<16x128xf32>
    %51 = arith.mulf %50, %43 : vector<16x128xf32>
    %cst_10 = arith.constant -4.39150654E-6 : f32
    %52 = vector.broadcast %cst_10 : f32 to vector<16x128xf32>
    %53 = arith.addf %51, %52 : vector<16x128xf32>
    %54 = arith.mulf %53, %43 : vector<16x128xf32>
    %cst_11 = arith.constant 2.1858087E-4 : f32
    %55 = vector.broadcast %cst_11 : f32 to vector<16x128xf32>
    %56 = arith.addf %54, %55 : vector<16x128xf32>
    %57 = arith.mulf %56, %43 : vector<16x128xf32>
    %cst_12 = arith.constant -0.00125372503 : f32
    %58 = vector.broadcast %cst_12 : f32 to vector<16x128xf32>
    %59 = arith.addf %57, %58 : vector<16x128xf32>
    %60 = arith.mulf %59, %43 : vector<16x128xf32>
    %cst_13 = arith.constant -0.00417768164 : f32
    %61 = vector.broadcast %cst_13 : f32 to vector<16x128xf32>
    %62 = arith.addf %60, %61 : vector<16x128xf32>
    %63 = arith.mulf %62, %43 : vector<16x128xf32>
    %cst_14 = arith.constant 0.246640727 : f32
    %64 = vector.broadcast %cst_14 : f32 to vector<16x128xf32>
    %65 = arith.addf %63, %64 : vector<16x128xf32>
    %66 = arith.mulf %65, %43 : vector<16x128xf32>
    %cst_15 = arith.constant 1.50140941 : f32
    %67 = vector.broadcast %cst_15 : f32 to vector<16x128xf32>
    %68 = arith.addf %66, %67 : vector<16x128xf32>
    %69 = math.sqrt %41 : vector<16x128xf32>
    %cst_16 = arith.constant 3.000000e+00 : f32
    %70 = vector.broadcast %cst_16 : f32 to vector<16x128xf32>
    %71 = arith.subf %69, %70 : vector<16x128xf32>
    %cst_17 = arith.constant -2.00214257E-4 : f32
    %72 = vector.broadcast %cst_17 : f32 to vector<16x128xf32>
    %73 = arith.mulf %72, %71 : vector<16x128xf32>
    %cst_18 = arith.constant 1.00950558E-4 : f32
    %74 = vector.broadcast %cst_18 : f32 to vector<16x128xf32>
    %75 = arith.addf %73, %74 : vector<16x128xf32>
    %76 = arith.mulf %75, %71 : vector<16x128xf32>
    %cst_19 = arith.constant 0.00134934322 : f32
    %77 = vector.broadcast %cst_19 : f32 to vector<16x128xf32>
    %78 = arith.addf %76, %77 : vector<16x128xf32>
    %79 = arith.mulf %78, %71 : vector<16x128xf32>
    %cst_20 = arith.constant -0.00367342844 : f32
    %80 = vector.broadcast %cst_20 : f32 to vector<16x128xf32>
    %81 = arith.addf %79, %80 : vector<16x128xf32>
    %82 = arith.mulf %81, %71 : vector<16x128xf32>
    %cst_21 = arith.constant 0.00573950773 : f32
    %83 = vector.broadcast %cst_21 : f32 to vector<16x128xf32>
    %84 = arith.addf %82, %83 : vector<16x128xf32>
    %85 = arith.mulf %84, %71 : vector<16x128xf32>
    %cst_22 = arith.constant -0.0076224613 : f32
    %86 = vector.broadcast %cst_22 : f32 to vector<16x128xf32>
    %87 = arith.addf %85, %86 : vector<16x128xf32>
    %88 = arith.mulf %87, %71 : vector<16x128xf32>
    %cst_23 = arith.constant 0.00943887047 : f32
    %89 = vector.broadcast %cst_23 : f32 to vector<16x128xf32>
    %90 = arith.addf %88, %89 : vector<16x128xf32>
    %91 = arith.mulf %90, %71 : vector<16x128xf32>
    %cst_24 = arith.constant 1.00167406 : f32
    %92 = vector.broadcast %cst_24 : f32 to vector<16x128xf32>
    %93 = arith.addf %91, %92 : vector<16x128xf32>
    %94 = arith.mulf %93, %71 : vector<16x128xf32>
    %cst_25 = arith.constant 2.83297682 : f32
    %95 = vector.broadcast %cst_25 : f32 to vector<16x128xf32>
    %96 = arith.addf %94, %95 : vector<16x128xf32>
    %cst_26 = arith.constant 5.000000e+00 : f32
    %97 = vector.broadcast %cst_26 : f32 to vector<16x128xf32>
    %98 = arith.cmpf olt, %41, %97 : vector<16x128xf32>
    %99 = arith.select %98, %68, %96 : vector<16x128xi1>, vector<16x128xf32>
    %100 = arith.mulf %99, %33 : vector<16x128xf32>
    %cst_27 = arith.constant 1.41421354 : f32
    %101 = vector.broadcast %cst_27 : f32 to vector<16x128xf32>
    %102 = arith.mulf %101, %100 : vector<16x128xf32>
    %c0_28 = arith.constant 0 : index
    %c0_29 = arith.constant 0 : index
    %103 = vector.load %arg2[%c0_28, %c0_29] : memref<16x128xf32, #tpu.memory_space<vmem>>, vector<16x128xf32>
    %cst_30 = arith.constant 0.00999999977 : f32
    %104 = vector.broadcast %cst_30 : f32 to vector<16x128xf32>
    %105 = arith.mulf %104, %102 : vector<16x128xf32>
    %cst_31 = arith.constant 1.000000e+00 : f32
    %106 = vector.broadcast %cst_31 : f32 to vector<16x128xf32>
    %107 = arith.addf %106, %105 : vector<16x128xf32>
    %108 = arith.mulf %103, %107 : vector<16x128xf32>
    %c0_32 = arith.constant 0 : index
    %c0_33 = arith.constant 0 : index
    %109 = vector.load %arg3[%c0_32, %c0_33] : memref<16x128xf32, #tpu.memory_space<vmem>>, vector<16x128xf32>
    tpu.vector_store %arg3[%c0_32, %c0_33], %108 {strides = array<i32>} : memref<16x128xf32, #tpu.memory_space<vmem>>, vector<16x128xf32>,
    return
  }
  func.func @transform_0(%arg0: i32, %arg1: memref<1xi32, #tpu.memory_space<smem>>) -> (i32, i32) {
    %c0_i32 = arith.constant 0 : i32
    %c0_i32_0 = arith.constant 0 : i32
    return %arg0, %c0_i32 : i32, i32
  }
  func.func @transform_1(%arg0: i32, %arg1: memref<1xi32, #tpu.memory_space<smem>>) -> (i32, i32) {
    %c0_i32 = arith.constant 0 : i32
    %c0_i32_0 = arith.constant 0 : i32
    return %arg0, %c0_i32 : i32, i32
  }
}

</mosaic_0001>

<bundles_post_ra>
// kernel: tpu_custom_call.1
= control target key start
LH: loop header
LB: loop body
LE: loop exit
PB: predicated region body
PF: predicated region fallthrough
CT: control target
= control target key end

     0   :  { %8 = vsyncpa [#allocation5], 0  ;;  %s344_s0 = inlined_call_operand.<no memory space> [shape: s32[1], index: 0, kind: input, shape index: {}]   ;;  %s345_s1 = inlined_call_operand.hbm [shape: f32[16,128], index: 1, kind: input, shape index: {}]   ;;  %s346_s2 = inlined_call_operand.hbm [shape: f32[16,128], index: 2, kind: output, shape index: {}]  }
   0x1   :  { %9 = vsyncpa [#allocation6], 0  ;;  %s260_s9 = smov [#allocation4]  }
   0x2   :  { %s15_s10 = sshll.u32 %s260_s9, 4  ;;  %s16_s10 = int_to_ptr.vmem [resolvable:$true] %s15_s10 }
   0x3   :  { %s224_s11 = scalar_lea.vmem %s16_s10, 256  ;;  %p229_p1 = scmp.lt.s32.totalorder %s16_s10, %s16_s10 }
   0x4   :  { %p225_p0 = scmp.ne.s32.totalorder %s16_s10, %s224_s11  ;;  %p230_p2 = scmp.lt.s32.totalorder %s224_s11, %s224_s11 }
   0x6   :  { %p231_p3 = por %p230_p2, %p229_p1 }
   0x8   :  { %p232_p4 = pnand %p231_p3, %p225_p0 }
   0xa   :  { %235 = shalt.err (!%p232_p4)
}
   0xb   :  { %s261_s12 = smov 128   ;;  %s262_s13 = smov 8  }
   0xc   :  { %21 = dma.hbm_to_vmem [thread:$0]  %s345_s1, 256, %s16_s10, [#allocation5], %s261_s12, %s261_s12, %s262_s13  }
   0xd   :  { %256 = dma.done.wait [#allocation5], 256  }
   0xe   :  { %257 = vsyncadd [#allocation5], 4294967040  ;;  %v26_v0 = vlaneseq  ;;  %s39_s18 = smul.u32 2654435769, %s344_s0  ;;  %s263_s0 = smov [#allocation7]  }
   0xf   :  { %s186_s1 = sshll.u32 %s263_s0, 4  ;;  %s187_s1 = int_to_ptr.vmem [resolvable:$true] %s186_s1 }
  0x10   :  { %v27_v1 = vshrl.u32 %v26_v0, 7  ;;  %v30_v2 = vand.u32 127, %v26_v0  ;;  %v40_v5 = vstv %s39_s18  ;;  %s236_s19 = scalar_lea.vmem %s187_s1, 256  ;;  %p241_p6 = scmp.lt.s32.totalorder %s187_s1, %s187_s1 }
  0x11   :  { %p237_p5 = scmp.ne.s32.totalorder %s187_s1, %s236_s19  ;;  %p242_p7 = scmp.lt.s32.totalorder %s236_s19, %s236_s19 }
  0x12   :  { %v31_v3 = vmul.u32 128, %v27_v1  ;;  %v28_v4 = vadd.s32 8, %v27_v1 }
  0x13   :  { %p243_p8 = por %p242_p7, %p241_p6 }
  0x14   :  { %v36_v6 = vadd.s32 %v31_v3, %v30_v2  ;;  %v32_v7 = vmul.u32 128, %v28_v4 }
  0x15   :  { %p244_p9 = pnand %p243_p8, %p237_p5 }
  0x16   :  { %v41_v8 = vadd.s32 %v40_v5, %v36_v6  ;;  %v37_v9 = vadd.s32 %v32_v7, %v30_v2 }
  0x18   :  { %v43_v10 = vshrl.u32 %v41_v8, 16  ;;  %v42_v11 = vadd.s32 %v40_v5, %v37_v9 }
  0x1a   :  { %v45_v12 = vxor.u32 %v43_v10, %v41_v8  ;;  %v44_v13 = vshrl.u32 %v42_v11, 16 }
  0x1c   :  { %v47_v14 = vmul.u32 2146121005, %v45_v12  ;;  %v46_v15 = vxor.u32 %v44_v13, %v42_v11 }
  0x1e   :  { %v49_v16 = vshrl.u32 %v47_v14, 15  ;;  %v48_v17 = vmul.u32 2146121005, %v46_v15 }
  0x20   :  { %v51_v18 = vxor.u32 %v49_v16, %v47_v14  ;;  %v50_v19 = vshrl.u32 %v48_v17, 15 }
  0x22   :  { %v53_v20 = vmul.u32 2221713035, %v51_v18  ;;  %v52_v21 = vxor.u32 %v50_v19, %v48_v17 }
  0x24   :  { %v55_v22 = vshrl.u32 %v53_v20, 16  ;;  %v54_v23 = vmul.u32 2221713035, %v52_v21 }
  0x26   :  { %v57_v24 = vxor.u32 %v55_v22, %v53_v20  ;;  %v56_v25 = vshrl.u32 %v54_v23, 16 }
  0x28   :  { %v59_v26 = vshrl.u32 %v57_v24, 9  ;;  %v58_v27 = vxor.u32 %v56_v25, %v54_v23 }
  0x2a   :  { %v61_v28 = vcvt.s32.f32 %v59_v26  ;;  %v60_v29 = vshrl.u32 %v58_v27, 9 }
  0x2c   :  { %v63_v30 = vadd.f32 0.5, %v61_v28  ;;  %v62_v31 = vcvt.s32.f32 %v60_v29 }
  0x2e   :  { %v65_v32 = vmul.f32 2.3841858e-07, %v63_v30  ;;  %v64_v33 = vadd.f32 0.5, %v62_v31 }
  0x30   :  { %v288_v34 = vadd.f32 -1.0, %v65_v32  ;;  %v66_v35 = vmul.f32 2.3841858e-07, %v64_v33 }
  0x32   :  { %v69_v36 = vsub.f32 1.0, %v288_v34  ;;  %v71_v37 = vadd.f32 1.0, %v288_v34  ;;  %v292_v38 = vadd.f32 -1.0, %v66_v35 }
  0x34   :  { %v73_v39 = vmul.f32 %v71_v37, %v69_v36  ;;  %v70_v40 = vsub.f32 1.0, %v292_v38  ;;  %v72_v41 = vadd.f32 1.0, %v292_v38 }
  0x36   :  { %208 = vlog2.f32 %v73_v39  ;;  %v74_v42 = vmul.f32 %v72_v41, %v70_v40 }
  0x38   :  { %210 = vlog2.f32 %v74_v42 }
  0x43   :  { %v209_v43 = vpop.eup %208 }
  0x44   :  { %v76_v44 = vmul.f32 0.6931472, %v209_v43 }
  0x45   :  { %v211_v45 = vpop.eup %210 }
  0x46   :  { %v296_v46 = vsub.f32 0.0, %v76_v44  ;;  %v78_v47 = vmul.f32 0.6931472, %v211_v45 }
  0x48   :  { %v299_v48 = vadd.f32 -2.5, %v296_v46  ;;  %212 = vrsqrt.f32 %v296_v46  ;;  %v302_v49 = vsub.f32 0.0, %v78_v47  ;;  %vm117_vm0 = vcmp.eq.f32.partialorder %v296_v46, inf }
  0x49   :  { %v120_v62 = vand.u32 2147483648, %v296_v46  ;;  %vm119_vm1 = vcmp.eq.f32.partialorder %v296_v46, 0.0  ;;  %vm163_vm4 = vcmp.lt.f32.partialorder %v296_v46, 5.0 }
  0x4a   :  { %v83_v50 = vmul.f32 2.8102264e-08, %v299_v48  ;;  %v306_v51 = vadd.f32 -2.5, %v302_v49  ;;  %214 = vrsqrt.f32 %v302_v49  ;;  %vm124_vm2 = vcmp.eq.f32.partialorder %v302_v49, inf }
  0x4b   :  { %v127_v6 = vand.u32 2147483648, %v302_v49  ;;  %vm126_vm3 = vcmp.eq.f32.partialorder %v302_v49, 0.0  ;;  %vm164_vm5 = vcmp.lt.f32.partialorder %v302_v49, 5.0 }
  0x4c   :  { %v85_v52 = vadd.f32 3.4327394e-07, %v83_v50  ;;  %v84_v53 = vmul.f32 2.8102264e-08, %v306_v51 }
  0x4e   :  { %v87_v54 = vmul.f32 %v299_v48, %v85_v52  ;;  %v86_v55 = vadd.f32 3.4327394e-07, %v84_v53 }
  0x50   :  { %v89_v56 = vadd.f32 -3.5233877e-06, %v87_v54  ;;  %v88_v57 = vmul.f32 %v306_v51, %v86_v55 }
  0x52   :  { %v91_v58 = vmul.f32 %v299_v48, %v89_v56  ;;  %v90_v59 = vadd.f32 -3.5233877e-06, %v88_v57 }
  0x54   :  { %v93_v60 = vadd.f32 -4.3915065e-06, %v91_v58  ;;  %v92_v63 = vmul.f32 %v306_v51, %v90_v59 }
  0x55   :  { %v213_v61 = vpop.eup %212 }
  0x56   :  { %v95_v0 = vmul.f32 %v299_v48, %v93_v60  ;;  %v116_v1 = vmul.f32 %v213_v61, %v296_v46  ;;  %v94_v2 = vadd.f32 -4.3915065e-06, %v92_v63 }
  0x57   :  { %v215_v3 = vpop.eup %214 }
  0x58   :  { %v97_v4 = vadd.f32 0.00021858087, %v95_v0  ;;  %v118_v5 = vsel %vm117_vm0, %v296_v46, %v116_v1  ;;  %v96_v8 = vmul.f32 %v306_v51, %v94_v2  ;;  %v123_v9 = vmul.f32 %v215_v3, %v302_v49 }
  0x59   :  { %v121_v7 = vsel %vm119_vm1, %v120_v62, %v118_v5 }
  0x5a   :  { %v202_v10 = vadd.f32 -3.0, %v121_v7  ;;  %v98_v11 = vadd.f32 0.00021858087, %v96_v8  ;;  %v125_v12 = vsel %vm124_vm2, %v302_v49, %v123_v9  ;;  %v99_v13 = vmul.f32 %v299_v48, %v97_v4  ;;  %v171_v9 = vld [vmem:[#allocation4] sm:$0xff] }
  0x5b   :  { %v128_v15 = vsel %vm126_vm3, %v127_v6, %v125_v12 }
  0x5c   :  { %v131_v14 = vmul.f32 -0.00020021426, %v202_v10  ;;  %v203_v16 = vadd.f32 -3.0, %v128_v15  ;;  %v100_v18 = vmul.f32 %v306_v51, %v98_v11  ;;  %v101_v20 = vadd.f32 -0.001253725, %v99_v13  ;;  %v172_v13 = vld [vmem:[#allocation4 + $0x8] sm:$0xff] }
  0x5e   :  { %v133_v17 = vadd.f32 0.00010095056, %v131_v14  ;;  %v132_v19 = vmul.f32 -0.00020021426, %v203_v16  ;;  %v102_v24 = vadd.f32 -0.001253725, %v100_v18  ;;  %v103_v26 = vmul.f32 %v299_v48, %v101_v20 }
  0x60   :  { %v135_v21 = vmul.f32 %v202_v10, %v133_v17  ;;  %v134_v22 = vadd.f32 0.00010095056, %v132_v19  ;;  %v104_v30 = vmul.f32 %v306_v51, %v102_v24  ;;  %v105_v32 = vadd.f32 -0.0041776816, %v103_v26 }
  0x62   :  { %v137_v23 = vadd.f32 0.0013493432, %v135_v21  ;;  %v136_v25 = vmul.f32 %v203_v16, %v134_v22  ;;  %v106_v37 = vadd.f32 -0.0041776816, %v104_v30  ;;  %v107_v40 = vmul.f32 %v299_v48, %v105_v32 }
  0x64   :  { %v139_v27 = vmul.f32 %v202_v10, %v137_v23  ;;  %v138_v28 = vadd.f32 0.0013493432, %v136_v25  ;;  %v108_v44 = vmul.f32 %v306_v51, %v106_v37  ;;  %v109_v47 = vadd.f32 0.24664073, %v107_v40 }
  0x66   :  { %v141_v29 = vadd.f32 -0.0036734284, %v139_v27  ;;  %v140_v31 = vmul.f32 %v203_v16, %v138_v28  ;;  %v110_v54 = vadd.f32 0.24664073, %v108_v44  ;;  %v111_v56 = vmul.f32 %v299_v48, %v109_v47 }
  0x68   :  { %v143_v33 = vmul.f32 %v202_v10, %v141_v29  ;;  %v142_v35 = vadd.f32 -0.0036734284, %v140_v31  ;;  %v112_v60 = vmul.f32 %v306_v51, %v110_v54  ;;  %v113_v62 = vadd.f32 1.5014094, %v111_v56 }
  0x6a   :  { %v145_v36 = vadd.f32 0.0057395077, %v143_v33  ;;  %v144_v39 = vmul.f32 %v203_v16, %v142_v35  ;;  %v114_v2 = vadd.f32 1.5014094, %v112_v60 }
  0x6c   :  { %v147_v41 = vmul.f32 %v202_v10, %v145_v36  ;;  %v146_v42 = vadd.f32 0.0057395077, %v144_v39 }
  0x6e   :  { %v149_v43 = vadd.f32 -0.0076224613, %v147_v41  ;;  %v148_v45 = vmul.f32 %v203_v16, %v146_v42 }
  0x70   :  { %v151_v50 = vmul.f32 %v202_v10, %v149_v43  ;;  %v150_v52 = vadd.f32 -0.0076224613, %v148_v45 }
  0x72   :  { %v153_v53 = vadd.f32 0.0094388705, %v151_v50  ;;  %v152_v55 = vmul.f32 %v203_v16, %v150_v52 }
  0x74   :  { %v155_v57 = vmul.f32 %v202_v10, %v153_v53  ;;  %v154_v58 = vadd.f32 0.0094388705, %v152_v55 }
  0x76   :  { %v157_v59 = vadd.f32 1.001674, %v155_v57  ;;  %v156_v61 = vmul.f32 %v203_v16, %v154_v58 }
  0x78   :  { %v159_v63 = vmul.f32 %v202_v10, %v157_v59  ;;  %v158_v0 = vadd.f32 1.001674, %v156_v61 }
  0x7a   :  { %v161_v1 = vadd.f32 2.8329768, %v159_v63  ;;  %v160_v3 = vmul.f32 %v203_v16, %v158_v0 }
  0x7c   :  { %v165_v4 = vsel %vm163_vm4, %v113_v62, %v161_v1  ;;  %v162_v48 = vadd.f32 2.8329768, %v160_v3 }
  0x7d   :  { %v167_v5 = vmul.f32 %v288_v34, %v165_v4 }
  0x7e   :  { %v166_v7 = vsel %vm164_vm5, %v114_v2, %v162_v48 }
  0x7f   :  { %v169_v6 = vmul.f32 1.4142135, %v167_v5  ;;  %v168_v8 = vmul.f32 %v292_v38, %v166_v7 }
  0x81   :  { %v173_v51 = vmul.f32 0.01, %v169_v6  ;;  %v170_v11 = vmul.f32 1.4142135, %v168_v8 }
  0x83   :  { %v175_v10 = vadd.f32 1.0, %v173_v51  ;;  %v174_v12 = vmul.f32 0.01, %v170_v11 }
  0x85   :  { %v177_v46 = vmul.f32 %v175_v10, %v171_v9  ;;  %v176_v14 = vadd.f32 1.0, %v174_v12 }
  0x87   :  { %179 = vst [vmem:[#allocation7] sm:$0xff] %v177_v46  ;;  %v178_v15 = vmul.f32 %v176_v14, %v172_v13 }
  0x89   :  { %180 = vst [vmem:[#allocation7 + $0x8] sm:$0xff] %v178_v15 }
  0x8a   :  { %247 = shalt.err (!%p244_p9)
}
  0x8b   :  { %192 = dma.vmem_to_hbm [thread:$0]  %s187_s1, 256, %s346_s2, [#allocation6], %s261_s12, %s261_s12, %s262_s13  }
  0x8c   :  { %258 = dma.done.wait [#allocation6], 256  }
  0x8d   :  { %259 = vsyncadd [#allocation6], 4294967040 }
  0x8e   :  { %196 = vsyncpa [#allocation5], 1 }
  0x8f   :  { %197 = vsyncpa [#allocation6], 1 }

</bundles_post_ra>
